<compile_context>
chip_gen: v6e
topology: v6e:2x2x1
jax: 0.10.0
libtpu: 0.0.40
codegen_flags: <defaults>
</compile_context>

<pallas_src>
import functools

import jax
import jax.numpy as jnp
from jax import lax
from jax.experimental import pallas as pl
from jax.experimental.pallas import tpu as pltpu


def _round_up(x, m):
    return (x + m - 1) // m * m


def _pick_tq(n, requested):
    """Largest tile <= requested that divides n, preferring multiples of 128."""
    cap = min(requested, n)
    divisors = [t for t in range(1, cap + 1) if n % t == 0]
    lane_dense = [t for t in divisors if t % 128 == 0]
    return max(lane_dense) if lane_dense else max(divisors)


def _device_kind():
    try:
        return jax.devices()[0].device_kind.lower()
    except Exception:
        return ""


def _vmem_limit_bytes():
    try:
        # ~85% of per-core VMEM: leaves headroom for Mosaic internal scratch,
        # double-buffered blocks and spills (v5e/v6e: ~108 MiB, v7x: ~54 MiB).
        return int(pltpu.get_tpu_info().vmem_capacity_bytes * 0.85)
    except Exception:
        return 64 * 1024 * 1024  # conservative fallback, safe on every gen


_NN = (((1,), (0,)), ((), ()))  # (rows, C) @ (C, cols) dot_general dims


# ----------------------------------------------------------------------------
# Kernel: one (batch, query-tile) grid step.
#   gamma_ref : SMEM (1,) f32
#   xb_ref    : VMEM (C, N) bf16          resident for all query tiles of b
#   w_ref     : VMEM (2*cq_pad + C, C) bf16   fused [wq*scale ; wk ; wv]
#   xres_ref  : VMEM (C, TQ) f32          per-tile residual (and Q source)
#   o_ref     : VMEM (C, TQ) f32          lane-dense output tile
#   k_scr     : VMEM (cq_pad, N) bf16
#   v_scr     : VMEM (C + 1, N) bf16      V plus an all-ones row (row sums)
# ----------------------------------------------------------------------------
def _sagan_attention_kernel(gamma_ref, xb_ref, w_ref, xres_ref, o_ref,
                            k_scr, v_scr, *, c, cq_pad, softmax_dtype):
    gamma = gamma_ref[0]                      # hoisted scalar read
    qi = pl.program_id(1)

    # K/V projection: once per batch element, reused by every query tile of
    # that batch (x block and scratch stay resident across the qi axis).
    @pl.when(qi == 0)
    def _project_kv():
        xb = xb_ref[...]                                              # (C, N) bf16
        k_scr[...] = lax.dot_general(
            w_ref[cq_pad:2 * cq_pad, :], xb, _NN,
            preferred_element_type=jnp.float32).astype(jnp.bfloat16)
        v_scr[:c, :] = lax.dot_general(
            w_ref[2 * cq_pad:, :], xb, _NN,
            preferred_element_type=jnp.float32).astype(jnp.bfloat16)
        # All-ones V row: the output matmul below then also yields the
        # un-normalized softmax row sums, already lane-dense as (1, TQ).
        v_scr[c:, :] = jnp.ones((1, xb.shape[1]), jnp.bfloat16)

    # Q for this tile, recomputed from the per-tile x block (tiny matmul,
    # cq_pad x C x TQ).  Keeps Q lane-dense with zero Q scratch and no dynamic
    # lane-dim slicing.
    x_tile = xres_ref[...].astype(jnp.bfloat16)                       # (C, TQ)
    q_tile = lax.dot_general(
        w_ref[:cq_pad, :], x_tile, _NN,
        preferred_element_type=jnp.float32).astype(jnp.bfloat16)      # (cq_pad, TQ)

    # energy[i, j] = <q_:,i , k_:,j>; 1/sqrt(C//8) is folded into wq.
    energy = lax.dot_general(
        q_tile, k_scr[...], (((0,), (0,)), ((), ())),
        preferred_element_type=jnp.float32)                           # (TQ, N) f32

    # Row-stable softmax numerator only; normalization is deferred to the
    # (C, TQ) output.  exp in bf16 on v6e/v7x (bf16 EUP), f32 on v5e.
    m = jnp.max(energy, axis=-1, keepdims=True)
    p = jnp.exp((energy - m).astype(softmax_dtype)).astype(jnp.bfloat16)

    # out_aug[:C] = V @ p^T  (C, TQ);  out_aug[C:] = row sums of p  (1, TQ).
    out_aug = lax.dot_general(
        v_scr[...], p, (((1,), (1,)), ((), ())),
        preferred_element_type=jnp.float32)                           # (C+1, TQ)

    # Deferred normalization fused with gamma: one (1, TQ) reciprocal (EUP)
    # and a (C, TQ) multiply-add instead of a (TQ, N) normalizing multiply.
    scale = gamma * pl.reciprocal(out_aug[c:, :], approx=True)        # (1, TQ)
    o_ref[...] = scale * out_aug[:c, :] + xres_ref[...]


def self_attention_pallas(x_nchw, wq, wk, wv, gamma, *, tq=None):
    """x_nchw: (B, C, H, W); wq/wk: (C//8, C); wv: (C, C); gamma: (1,)."""
    B, C, H, W = x_nchw.shape
    N = H * W
    Cq = wq.shape[0]
    cq_pad = _round_up(max(Cq, 8), 8)          # sublane-aligned query width
    O = 2 * cq_pad + C

    kind = _device_kind()
    # bf16 EUP/VPU exists on v6e / v7x; keep softmax math in f32 on v5e.
    softmax_dtype = jnp.bfloat16 if ("v6" in kind or "v7" in kind) else jnp.float32
    if tq is None:
        tq = 128 if "v7" in kind else 256      # tighter VMEM budget on v7x
    tq = _pick_tq(N, tq)
    nq = N // tq
    # TODO(synk): for very large feature maps (resident bf16 K/V plus (TQ, N)
    # softmax intermediates approaching the per-core VMEM budget, e.g.
    # C=512 / N>=8K on v7x) add a KV-tile grid axis with online softmax.
    # TODO(synk): when B == 1 on v7x, hoist the K/V projection into its own
    # pallas_call and mark the query-tile axis "parallel" to feed both cores.

    # (B, C, H, W) -> (B, C, N): pure reshape (n = h*W + w, identical to
    # torch .view(B, C, H*W)); no HBM transpose anywhere.
    x_flat = x_nchw.reshape(B, C, N).astype(jnp.float32)
    x_bf16 = x_flat.astype(jnp.bfloat16)       # bf16 copy feeds the projection

    # Fused projection weight [wq*scale ; wk ; wv] (zero-padded query/key rows
    # are mathematically inert); energy scale folded into the query rows at
    # trace time; bf16 for the MXU.
    scale = 1.0 / jnp.sqrt(jnp.float32(Cq))
    w_fused = jnp.zeros((O, C), jnp.float32)
    w_fused = w_fused.at[:Cq].set(wq.astype(jnp.float32) * scale)
    w_fused = w_fused.at[cq_pad:cq_pad + Cq].set(wk.astype(jnp.float32))
    w_fused = w_fused.at[2 * cq_pad:].set(wv.astype(jnp.float32))
    w_fused = w_fused.astype(jnp.bfloat16)

    gamma = gamma.reshape((1,)).astype(jnp.float32)

    kernel = functools.partial(_sagan_attention_kernel, c=C, cq_pad=cq_pad,
                               softmax_dtype=softmax_dtype)

    out_flat = pl.pallas_call(
        kernel,
        out_shape=jax.ShapeDtypeStruct((B, C, N), jnp.float32),
        grid_spec=pltpu.PrefetchScalarGridSpec(
            num_scalar_prefetch=0,
            grid=(B, nq),
            in_specs=[
                pl.BlockSpec(memory_space=pltpu.SMEM),                  # gamma
                pl.BlockSpec((None, C, N), lambda b, qi: (b, 0, 0)),    # x bf16 (projection, per batch)
                pl.BlockSpec((O, C), lambda b, qi: (0, 0)),             # fused weights (resident)
                pl.BlockSpec((None, C, tq), lambda b, qi: (b, 0, qi)),  # x f32 tile (residual + Q)
            ],
            out_specs=pl.BlockSpec((None, C, tq), lambda b, qi: (b, 0, qi)),
            scratch_shapes=[
                pltpu.VMEM((cq_pad, N), jnp.bfloat16),   # K
                pltpu.VMEM((C + 1, N), jnp.bfloat16),    # V + ones row
            ],
        ),
        compiler_params=pltpu.CompilerParams(
            dimension_semantics=("parallel", "arbitrary"),
            vmem_limit_bytes=_vmem_limit_bytes()),
    )(gamma, x_bf16, w_fused, x_flat)

    # (B, C, N) -> (B, C, H, W): reshape only.
    return out_flat.reshape(B, C, H, W)


# ----------------------------------------------------------------------------
# Parameter construction (deterministic, in-script).
# ----------------------------------------------------------------------------
def _spectral_normalize(w):
    """Divide the (out, in) weight by its largest singular value, mimicking
    nn.utils.spectral_norm at inference (idealized, exact sigma)."""
    sigma = jnp.linalg.svd(w, compute_uv=False)[0]
    return w / sigma


def make_params(key, in_dim):
    kq, kk, kv = jax.random.split(key, 3)
    cq = in_dim // 8
    wq = _spectral_normalize(jax.random.normal(kq, (cq, in_dim), jnp.float32) * 0.1)
    wk = _spectral_normalize(jax.random.normal(kk, (cq, in_dim), jnp.float32) * 0.1)
    wv = _spectral_normalize(jax.random.normal(kv, (in_dim, in_dim), jnp.float32) * 0.1)
    # PyTorch inits gamma to 0 (identity output); use 0.5 so the attention
    # path is actually exercised in the numeric check.
    gamma = jnp.array([0.5], jnp.float32)
    return wq, wk, wv, gamma


# ----------------------------------------------------------------------------
# Pure-JAX f32 reference (mirrors the PyTorch forward exactly).
# ----------------------------------------------------------------------------
def self_attention_ref(x, wq, wk, wv, gamma):
    B, C, H, W = x.shape
    N = H * W
    cq = wq.shape[0]
    x_ = x.reshape(B, C, N)                               # (B, C, N)
    q = jnp.einsum("oc,bcn->bno", wq, x_)                 # (B, N, Cq)
    k = jnp.einsum("oc,bcn->bon", wk, x_)                 # (B, Cq, N)
    v = jnp.einsum("oc,bcn->bon", wv, x_)                 # (B, C, N)
    energy = jnp.einsum("bno,bom->bnm", q, k) / jnp.sqrt(jnp.float32(cq))
    attn = jax.nn.softmax(energy, axis=-1)                # (B, N, N)
    out = jnp.einsum("bcm,bnm->bcn", v, attn)             # (B, C, N)
    out = out.reshape(B, C, H, W)
    return gamma[0] * out + x


if __name__ == "__main__":
    B, C, H, W = 2, 32, 16, 16      # C divisible by 8; N = H*W = 256 (lane-dense)
    key = jax.random.PRNGKey(0)
    kx, kp = jax.random.split(key)
    x = jax.random.normal(kx, (B, C, H, W), jnp.float32)
    wq, wk, wv, gamma = make_params(kp, C)

    out = jax.block_until_ready(self_attention_pallas(x, wq, wk, wv, gamma))
    ref = self_attention_ref(x, wq, wk, wv, gamma)

    assert out.shape == (B, C, H, W)
    max_err = float(jnp.max(jnp.abs(out - ref)))
    # bf16 MXU operands / bf16 softmax numerator (f32 accumulation, exact f32
    # residual) -> bf16-level tolerance.
    assert max_err < 2e-2, max_err
    print("KERNEL_OK")
</pallas_src>

<mosaic_0001>
module attributes {stable_mosaic.version = 11 : i64} {
  func.func @_sagan_attention_kernel(%arg0: i32, %arg1: i32, %arg2: memref<1xf32, #tpu.memory_space<smem>>, %arg3: memref<1x32x256xbf16, #tpu.memory_space<vmem>>, %arg4: memref<48x32xbf16, #tpu.memory_space<vmem>>, %arg5: memref<1x32x256xf32, #tpu.memory_space<vmem>>, %arg6: memref<1x32x256xf32, #tpu.memory_space<vmem>>, %arg7: memref<8x256xbf16, #tpu.memory_space<vmem>>, %arg8: memref<33x256xbf16, #tpu.memory_space<vmem>>) attributes {dimension_semantics = [#tpu.dimension_semantics<parallel>, #tpu.dimension_semantics<arbitrary>], iteration_bounds = array<i64: 2, 1>, scalar_prefetch = 0 : i64, scratch_operands = 2 : i64, tpu.core_type = #tpu.core_type<tc>, window_params = [{transform_indices = @transform_0, window_bounds = array<i64: 1>}, {transform_indices = @transform_1, window_bounds = array<i64: 1, 32, 256>}, {pipeline_mode = #tpu.pipeline_mode<synchronous>, transform_indices = @transform_2, window_bounds = array<i64: 48, 32>}, {transform_indices = @transform_3, window_bounds = array<i64: 1, 32, 256>}, {transform_indices = @transform_4, window_bounds = array<i64: 1, 32, 256>}]} {
    %c0 = arith.constant 0 : index
    %0 = memref.load %arg2[%c0] : memref<1xf32, #tpu.memory_space<smem>>
    %c0_i32 = arith.constant 0 : i32
    %1 = arith.cmpi eq, %arg1, %c0_i32 : i32
    %2 = arith.extui %1 : i1 to i32
    %c0_i32_0 = arith.constant 0 : i32
    %3 = arith.cmpi ne, %2, %c0_i32_0 : i32
    scf.if %3 {
      %c0_19 = arith.constant 0 : index
      %c0_20 = arith.constant 0 : index
      %c0_21 = arith.constant 0 : index
      %33 = vector.load %arg3[%c0_19, %c0_20, %c0_21] : memref<1x32x256xbf16, #tpu.memory_space<vmem>>, vector<1x32x256xbf16>
      %34 = vector.shape_cast %33 : vector<1x32x256xbf16> to vector<32x256xbf16>
      %c8 = arith.constant 8 : index
      %c0_22 = arith.constant 0 : index
      %35 = vector.load %arg4[%c8, %c0_22] : memref<48x32xbf16, #tpu.memory_space<vmem>>, vector<8x32xbf16>
      %cst_23 = arith.constant dense<0.000000e+00> : vector<8x256xf32>
      %36 = tpu.matmul %35, %34, %cst_23 {dimension_numbers = #tpu.dot_dimension_numbers<[1], [0], [0], [1], [0, 0, 1, 1], [], []>} : vector<8x32xbf16>, vector<32x256xbf16>, vector<8x256xf32> -> vector<8x256xf32>
      %37 = arith.truncf %36 : vector<8x256xf32> to vector<8x256xbf16>
      %c0_24 = arith.constant 0 : index
      %c0_25 = arith.constant 0 : index
      %38 = vector.load %arg7[%c0_24, %c0_25] : memref<8x256xbf16, #tpu.memory_space<vmem>>, vector<8x256xbf16>
      tpu.vector_store %arg7[%c0_24, %c0_25], %37 {strides = array<i32>} : memref<8x256xbf16, #tpu.memory_space<vmem>>, vector<8x256xbf16>,
      %c16 = arith.constant 16 : index
      %c0_26 = arith.constant 0 : index
      %39 = vector.load %arg4[%c16, %c0_26] : memref<48x32xbf16, #tpu.memory_space<vmem>>, vector<32x32xbf16>
      %cst_27 = arith.constant dense<0.000000e+00> : vector<32x256xf32>
      %40 = tpu.matmul %39, %34, %cst_27 {dimension_numbers = #tpu.dot_dimension_numbers<[1], [0], [0], [1], [0, 0, 1, 1], [], []>} : vector<32x32xbf16>, vector<32x256xbf16>, vector<32x256xf32> -> vector<32x256xf32>
      %41 = arith.truncf %40 : vector<32x256xf32> to vector<32x256xbf16>
      %c0_28 = arith.constant 0 : index
      %c0_29 = arith.constant 0 : index
      %42 = vector.load %arg8[%c0_28, %c0_29] : memref<33x256xbf16, #tpu.memory_space<vmem>>, vector<32x256xbf16>
      tpu.vector_store %arg8[%c0_28, %c0_29], %41 {strides = array<i32>} : memref<33x256xbf16, #tpu.memory_space<vmem>>, vector<32x256xbf16>,
      %cst_30 = arith.constant 1.000000e+00 : bf16
      %43 = vector.broadcast %cst_30 : bf16 to vector<1x256xbf16>
      %c32 = arith.constant 32 : index
      %c0_31 = arith.constant 0 : index
      %44 = vector.load %arg8[%c32, %c0_31] : memref<33x256xbf16, #tpu.memory_space<vmem>>, vector<1x256xbf16>
      tpu.vector_store %arg8[%c32, %c0_31], %43 {strides = array<i32>} : memref<33x256xbf16, #tpu.memory_space<vmem>>, vector<1x256xbf16>,
    } else {
    }
    %c0_1 = arith.constant 0 : index
    %c0_2 = arith.constant 0 : index
    %c0_3 = arith.constant 0 : index
    %4 = vector.load %arg5[%c0_1, %c0_2, %c0_3] : memref<1x32x256xf32, #tpu.memory_space<vmem>>, vector<1x32x256xf32>
    %5 = vector.shape_cast %4 : vector<1x32x256xf32> to vector<32x256xf32>
    %6 = arith.truncf %5 : vector<32x256xf32> to vector<32x256xbf16>
    %c0_4 = arith.constant 0 : index
    %c0_5 = arith.constant 0 : index
    %7 = vector.load %arg4[%c0_4, %c0_5] : memref<48x32xbf16, #tpu.memory_space<vmem>>, vector<8x32xbf16>
    %cst = arith.constant dense<0.000000e+00> : vector<8x256xf32>
    %8 = tpu.matmul %7, %6, %cst {dimension_numbers = #tpu.dot_dimension_numbers<[1], [0], [0], [1], [0, 0, 1, 1], [], []>} : vector<8x32xbf16>, vector<32x256xbf16>, vector<8x256xf32> -> vector<8x256xf32>
    %9 = arith.truncf %8 : vector<8x256xf32> to vector<8x256xbf16>
    %c0_6 = arith.constant 0 : index
    %c0_7 = arith.constant 0 : index
    %10 = vector.load %arg7[%c0_6, %c0_7] : memref<8x256xbf16, #tpu.memory_space<vmem>>, vector<8x256xbf16>
    %cst_8 = arith.constant dense<0.000000e+00> : vector<256x256xf32>
    %11 = tpu.matmul %9, %10, %cst_8 {dimension_numbers = #tpu.dot_dimension_numbers<[0], [0], [1], [1], [0, 1, 1, 1], [], []>} : vector<8x256xbf16>, vector<8x256xbf16>, vector<256x256xf32> -> vector<256x256xf32>
    %cst_9 = arith.constant dense<0xFF800000> : vector<256xf32>
    %12 = vector.multi_reduction <maximumf>, %11, %cst_9 [1] : vector<256x256xf32> to vector<256xf32>
    %13 = vector.shape_cast %12 : vector<256xf32> to vector<256x1xf32>
    %14 = vector.broadcast %13 : vector<256x1xf32> to vector<256x256xf32>
    %15 = arith.subf %11, %14 : vector<256x256xf32>
    %16 = math.exp %15 : vector<256x256xf32>
    %17 = arith.truncf %16 : vector<256x256xf32> to vector<256x256xbf16>
    %c0_10 = arith.constant 0 : index
    %c0_11 = arith.constant 0 : index
    %18 = vector.load %arg8[%c0_10, %c0_11] : memref<33x256xbf16, #tpu.memory_space<vmem>>, vector<33x256xbf16>
    %cst_12 = arith.constant dense<0.000000e+00> : vector<33x256xf32>
    %19 = tpu.matmul %18, %17, %cst_12 {dimension_numbers = #tpu.dot_dimension_numbers<[1], [1], [0], [0], [0, 0, 1, 0], [], []>} : vector<33x256xbf16>, vector<256x256xbf16>, vector<33x256xf32> -> vector<33x256xf32>
    %20 = vector.extract_strided_slice %19 {offsets = [32, 0], sizes = [1, 256], strides = [1, 1]} : vector<33x256xf32> to vector<1x256xf32>
    %21 = tpu.reciprocal %20 {approx = true} : vector<1x256xf32> -> vector<1x256xf32>
    %22 = vector.broadcast %0 : f32 to vector<1x256xf32>
    %23 = arith.mulf %22, %21 : vector<1x256xf32>
    %24 = vector.extract_strided_slice %19 {offsets = [0, 0], sizes = [32, 256], strides = [1, 1]} : vector<33x256xf32> to vector<32x256xf32>
    %25 = vector.broadcast %23 : vector<1x256xf32> to vector<32x256xf32>
    %26 = arith.mulf %25, %24 : vector<32x256xf32>
    %c0_13 = arith.constant 0 : index
    %c0_14 = arith.constant 0 : index
    %c0_15 = arith.constant 0 : index
    %27 = vector.load %arg5[%c0_13, %c0_14, %c0_15] : memref<1x32x256xf32, #tpu.memory_space<vmem>>, vector<1x32x256xf32>
    %28 = vector.shape_cast %27 : vector<1x32x256xf32> to vector<32x256xf32>
    %29 = arith.addf %26, %28 : vector<32x256xf32>
    %c0_16 = arith.constant 0 : index
    %c0_17 = arith.constant 0 : index
    %c0_18 = arith.constant 0 : index
    %30 = vector.load %arg6[%c0_16, %c0_17, %c0_18] : memref<1x32x256xf32, #tpu.memory_space<vmem>>, vector<1x32x256xf32>
    %31 = vector.shape_cast %30 : vector<1x32x256xf32> to vector<32x256xf32>
    %32 = vector.shape_cast %29 : vector<32x256xf32> to vector<1x32x256xf32>
    tpu.vector_store %arg6[%c0_16, %c0_17, %c0_18], %32 {strides = array<i32>} : memref<1x32x256xf32, #tpu.memory_space<vmem>>, vector<1x32x256xf32>,
    return
  }
  func.func @transform_0(%arg0: i32, %arg1: i32) -> i32 {
    %c0_i32 = arith.constant 0 : i32
    %c0_i32_0 = arith.constant 0 : i32
    return %c0_i32 : i32
  }
  func.func @transform_1(%arg0: i32, %arg1: i32) -> (i32, i32, i32) {
    %c0_i32 = arith.constant 0 : i32
    %c0_i32_0 = arith.constant 0 : i32
    %c0_i32_1 = arith.constant 0 : i32
    return %arg0, %c0_i32, %c0_i32_0 : i32, i32, i32
  }
  func.func @transform_2(%arg0: i32, %arg1: i32) -> (i32, i32) {
    %c0_i32 = arith.constant 0 : i32
    %c0_i32_0 = arith.constant 0 : i32
    %c0_i32_1 = arith.constant 0 : i32
    return %c0_i32, %c0_i32_0 : i32, i32
  }
  func.func @transform_3(%arg0: i32, %arg1: i32) -> (i32, i32, i32) {
    %c0_i32 = arith.constant 0 : i32
    %c0_i32_0 = arith.constant 0 : i32
    return %arg0, %c0_i32, %arg1 : i32, i32, i32
  }
  func.func @transform_4(%arg0: i32, %arg1: i32) -> (i32, i32, i32) {
    %c0_i32 = arith.constant 0 : i32
    %c0_i32_0 = arith.constant 0 : i32
    return %arg0, %c0_i32, %arg1 : i32, i32, i32
  }
}

</mosaic_0001>

<bundles_post_ra>
// kernel: tpu_custom_call.1
= control target key start
LH: loop header
LB: loop body
LE: loop exit
PB: predicated region body
PF: predicated region fallthrough
CT: control target
= control target key end

     0   :  { %s2418_s0 = inlined_call_operand.<no memory space> [shape: f32[1], index: 0, kind: input, shape index: {}]   ;;  %s2419_s1 = inlined_call_operand.hbm [shape: bf16[2,32,256], index: 1, kind: input, shape index: {}]   ;;  %s2420_s2 = inlined_call_operand.vmem [shape: bf16[48,32], index: 2, kind: input, shape index: {}]   ;;  %s2421_s3 = inlined_call_operand.hbm [shape: f32[2,32,256], index: 3, kind: input, shape index: {}]   ;;  %s2422_s4 = inlined_call_operand.hbm [shape: f32[2,32,256], index: 4, kind: output, shape index: {}]  }
   0x1   :  { %2438 = sst [smem:[#allocation29_spill]] %s2419_s1 }
   0x2   :  { %9 = sst [smem:[#allocation4]] %s2418_s0 }
   0x3   :  { %10 = vsyncpa [#allocation6], 0 }
   0x4   :  { %12 = vsyncpa [#allocation6 + $0x1], 0 }
   0x5   :  { %13 = vsyncpa [#allocation9], 0 }
   0x6   :  { %15 = vsyncpa [#allocation9 + $0x1], 0 }
   0x7   :  { %16 = vsyncpa [#allocation7], 0 }
   0x8   :  { %18 = vsyncpa [#allocation7 + $0x1], 0  ;;  %s1874_s17 = smov 0   ;;  %s1876_s18 = smov 0  }
   0x9   :  { %s1878_s19 = smov 0   ;;  %s1880_s20 = smov 0  }
   0xa   :  { %s1882_s21 = smov 0   ;;  %s1884_s22 = smov 0  }
   0xb LB: > { %s1397_s0 = sadd.s32 4294967295, %s1834_s22   ;;  %s1398_s23 = sadd.s32 4294967294, %s1834_s22   ;;  %s1834_s22 = sphi %s1884_s22, %s24_s22   ;;  %s1830_s21 = sphi %s1882_s21, %s2480_s21   ;;  %s1826_s20 = sphi %s1880_s20, %s2479_s20   ;;  %s1822_s19 = sphi %s1878_s19, %s2478_s19   ;;  %s1818_s18 = sphi %s1876_s18, %s2477_s18   ;;  %s1814_s17 = sphi %s1874_s17, %s2476_s17  }
   0xc   : > { %s36_s24 = sadd.s32 1, %s1830_s21  ;;  %s64_s25 = sadd.s32 1, %s1822_s19 }
   0xd   : > { %p38_p0 = scmp.ge.s32.totalorder %s36_s24, 2  ;;  %p71_p1 = scmp.ne.s32.totalorder %s1822_s19, %s1818_s18 }
   0xe   : > { %p72_p2 = scmp.eq.s32.totalorder %s1834_s22, 0  ;;  %p77_p3 = scmp.ne.s32.totalorder %s1818_s18, %s1814_s17 }
   0xf   : > { %s2482_s24 = smov (%p38_p0, %s36_s24), 0  ;;  %p78_p5 = scmp.eq.s32.totalorder %s1397_s0, 0 }
  0x10   : > { %p1915_p4 = por %p72_p2, %p71_p1  ;;  %s61_s27 = ssub.s32 %s1830_s21, %s2482_s24 }
  0x11   : > { %p152_p6 = scmp.eq.s32.totalorder %s1397_s0, 1  ;;  %p62_p7 = scmp.eq.s32.totalorder %s61_s27, 0 }
  0x12   : > { %p1921_p8 = por %p78_p5, %p77_p3  ;;  %p158_p10 = scmp.eq.s32.totalorder %s1398_s23, 1 }
  0x13   : > { %p1925_p9 = por %p152_p6, %p71_p1  ;;  %p1400_p12 = scmp.ge.s32.totalorder %s1834_s22, 2 }
  0x14   : > { %s1930_s30 = scalar_select %p62_p7, %s1822_s19, %s64_s25  }
  0x15   : > { %p1932_p11 = por %p158_p10, %p77_p3  ;;  %p1483_p13 = scmp.lt.s32.totalorder %s1834_s22, 2 }
  0x16   : > { %s1939_s6 = sand.u32 1, %s1822_s19   ;;  %s1456_s8 = sshll.u32 %s1830_s21, 9 }
  0x17   : > { %s1401_s7 = sshll.u32 %s1939_s6, 5  ;;  %s2443_s1 = sld [smem:[#allocation29_spill]] }
  0x18   : > { %s188_s12 = scalar_lea.vmem [#allocation5], %s1401_s7  ;;  %p1948_p0 = pnand %p1483_p13, %p1915_p4 }
  0x19   : > { %s195_s13 = sshll.u32 %s188_s12, 4  ;;  %p1407_p1 = scmp.ge.s32.totalorder %s1834_s22, 1  ;;  %s196_s13 = int_to_ptr.vmem [resolvable:$true] %s195_s13 }
  0x1a   : > { %s185_s15 = scalar_lea.sflag [#allocation6], %s1939_s6  ;;  %p1696_p2 = pneg %p1948_p0 }
  0x1b   : > { %s1707_s16 = scalar_lea.vmem %s196_s13, 512  ;;  %s1836_s0 = smov [#allocation5]  }
  0x1c   : > { %p1708_p3 = scmp.ne.s32.totalorder %s196_s13, %s1707_s16  ;;  %s1712_s23 = sshll.u32 %s1836_s0, 4  ;;  %s1713_s23 = int_to_ptr.vmem [resolvable:$false] %s1712_s23 }
  0x1d   : > { %s194_s11 = scalar_lea.hbm %s2443_s1, %s1456_s8  ;;  %s1714_s25 = scalar_lea.vmem %s1713_s23, 1024 }
  0x1e   : > { %p1710_p5 = pnand %p1708_p3, %p1696_p2  ;;  %p1715_p4 = scmp.lt.s32.totalorder %s196_s13, %s1713_s23 }
  0x1f   : > { %p1716_p7 = scmp.lt.s32.totalorder %s1714_s25, %s1707_s16 }
  0x20   : > { %p1711_p6 = pneg %p1710_p5 }
  0x21   : > { %p1717_p10 = por %p1716_p7, %p1715_p4 }
  0x23   : > { %p1718_p13 = pnand %p1717_p10, %p1711_p6 }
  0x25   : > { %1721 = shalt.err (!%p1718_p13)
}
  0x26   : > { %s1837_s26 = smov 128   ;;  %s1838_s27 = smov 8  }
  0x27   : > { %1475 = dma.hbm_to_vmem [thread:$0]  (!%p1948_p0), %s194_s11, 512, %s196_s13, %s185_s15, %s1837_s26, %s1837_s26, %s1838_s27  }
  0x28   : > { %p226_p3 = scmp.lt.s32.totalorder %s1834_s22, 3  ;;  %s1404_s7 = sshll.u32 %s1939_s6, 6 }
  0x29   : > { %s1457_s8 = sshll.u32 %s1830_s21, 10  ;;  %s209_s0 = scalar_lea.vmem [#allocation8], %s1404_s7 }
  0x2a   : > { %p1966_p5 = pnand %p1407_p1, %p226_p3  ;;  %s217_s16 = scalar_lea.hbm %s2421_s3, %s1457_s8 }
  0x2b   : > { %s218_s23 = sshll.u32 %s209_s0, 4  ;;  %s206_s25 = scalar_lea.sflag [#allocation9], %s1939_s6  ;;  %s219_s23 = int_to_ptr.vmem [resolvable:$true] %s218_s23 }
  0x2c   : > { %s1735_s1 = scalar_lea.vmem %s219_s23, 1024  ;;  %s1839_s11 = smov [#allocation8]  }
  0x2d   : > { %p1736_p6 = scmp.ne.s32.totalorder %s219_s23, %s1735_s1  ;;  %s1740_s13 = sshll.u32 %s1839_s11, 4  ;;  %s1741_s13 = int_to_ptr.vmem [resolvable:$false] %s1740_s13 }
  0x2e   : > { %s1742_s15 = scalar_lea.vmem %s1741_s13, 2048  ;;  %p1743_p1 = scmp.lt.s32.totalorder %s219_s23, %s1741_s13 }
  0x2f   : > { %p1738_p4 = pnand %p1736_p6, %p1696_p2  ;;  %p1744_p10 = scmp.lt.s32.totalorder %s1742_s15, %s1735_s1 }
  0x31   : > { %p1739_p7 = pneg %p1738_p4  ;;  %p1745_p13 = por %p1744_p10, %p1743_p1 }
  0x33   : > { %p1746_p3 = pnand %p1745_p13, %p1739_p7 }
  0x35   : > { %1749 = shalt.err (!%p1746_p3)
}
  0x36   : > { %s1840_s26 = smov 256   ;;  %s1841_s27 = smov 16  }
  0x37   : > { %1478 = dma.hbm_to_vmem [thread:$0]  (!%p1948_p0), %s217_s16, 1024, %s219_s23, %s206_s25, %s1840_s26, %s1840_s26, %s1841_s27  }
  0x38   : > { %230 = sbr.rel (%p1966_p5) target bundleno = 1173 (0x495), region = 36 }
  0x3d   : > { %s1982_s6 = sand.u32 1, %s1818_s18  }
  0x3e   : > { %s1408_s7 = sshll.u32 %s1982_s6, 5  ;;  %s233_s8 = scalar_lea.sflag [#allocation6], %s1982_s6 }
  0x3f   : > { %s236_s1 = scalar_lea.vmem [#allocation5], %s1408_s7 }
  0x40   : > { %1801 = dma.done.wait (%p1921_p8), %s233_s8, 512  }
  0x41   : > { %1803 = vsyncadd (%p1921_p8), %s233_s8, 4294966784  ;;  %s1409_s14 = sshll.u32 %s1982_s6, 6  ;;  %s242_s9 = scalar_lea.sflag [#allocation9], %s1982_s6 }
  0x42   : > { %s1994_s10 = scalar_lea.vmem [#allocation8], %s1409_s14 }
  0x43   : > { %1805 = dma.done.wait (%p1921_p8), %s242_s9, 1024  }
  0x44   : > { %1807 = vsyncadd (%p1921_p8), %s242_s9, 4294966272  ;;  %v1842_v0 = vmov 0   ;;  %v1540_v1 = vld [vmem:[%s236_s1 + $0x14] ss:$8 sps:$4 sm:$0xff]   ;;  %v1542_v2 = vld [vmem:[%s236_s1 + $0x10] ss:$8 sps:$4 sm:$0xff]  }
  0x45   : > { %345 = vmatprep.mubr.bf16.mxu0 %v1842_v0  ;;  %415 = vmatprep.mubr.bf16.mxu1 %v1842_v0  ;;  %v1543_v3 = vld [vmem:[%s236_s1 + $0x4] ss:$8 sps:$4 sm:$0xff]   ;;  %v1545_v4 = vld [vmem:[%s236_s1] ss:$8 sps:$4 sm:$0xff]   ;;  %v481_v6 = vld [vmem:[%s1994_s10 + $0x38] sm:$0xff]  ;;  %vm309_vm0 = vcmask 261120  }
  0x46   : > { %325 = vmatprep.subr.bf16.mxu0 %v1540_v1  ;;  %395 = vmatprep.subr.bf16.mxu1 %v1540_v1  ;;  %v479_v5 = vld [vmem:[%s1994_s10 + $0x28] sm:$0xff]  ;;  %v478_v8 = vld [vmem:[%s1994_s10 + $0x20] sm:$0xff]  ;;  %v480_v9 = vld [vmem:[%s1994_s10 + $0x30] sm:$0xff]  ;;  %vm621_vm1 = vcmask 1043456   ;;  %vm572_vm2 = vcmask 64512   ;;  %vm464_vm3 = vcmask 1040384  }
  0x47   : > { %326 = vmatpush1.bf16.msra.mxu0 %v1542_v2  ;;  %396 = vmatpush1.bf16.msra.mxu1 %v1542_v2  ;;  %v485_v7 = vpack.c.bf16 %v481_v6, %v479_v5  ;;  %v475_v10 = vld [vmem:[%s1994_s10 + $0x8] sm:$0xff]  ;;  %v477_v11 = vld [vmem:[%s1994_s10 + $0x18] sm:$0xff]  ;;  %v484_v13 = vpack.c.bf16 %v480_v9, %v478_v8  ;;  %v474_v15 = vld [vmem:[%s1994_s10] sm:$0xff]  ;;  %vm465_vm4 = vsmask.f32 256  ;;  %vm467_vm5 = vcmask 1044484  }
  0x48   : > { %327 = vmatprep.subr.bf16.mxu0 %v1543_v3  ;;  %397 = vmatprep.subr.bf16.mxu1 %v1543_v3  ;;  %v288_v12 = vld [vmem:[%s2420_s2 + $0x4] sm:$0xf]  ;;  %v483_v14 = vpack.c.bf16 %v477_v11, %v475_v10  ;;  %v476_v16 = vld [vmem:[%s1994_s10 + $0x10] sm:$0xff]  ;;  %v486_v18 = vld [vmem:[%s2420_s2] sm:$0xf]  ;;  %s279_s15 = sld [smem:[#allocation4]] }
  0x49   : > { %v482_v17 = vpack.c.bf16 %v476_v16, %v474_v15  ;;  %v1546_v51 = vld [vmem:[%s2420_s2 + $0x8] sm:$0xff]   ;;  %v1547_v56 = vld [vmem:[%s2420_s2 + $0x10] sm:$0xff]   ;;  %vm468_vm6 = vsmask.f32 4352  ;;  %vm466_vm7 = vmand %vm464_vm3, %vm465_vm4  ;;  %s1463_s26 = sshll.u32 %s1826_s20, 10  ;;  %s2346_s27 = scalar_lea.vmem [#allocation10], %s1409_s14 }
  0x4a   : > { %vm469_vm8 = vmand %vm467_vm5, %vm468_vm6  ;;  %s1287_s7 = sshll.u32 %s2346_s27, 4  ;;  %s2360_s1 = scalar_lea.hbm %s2422_s4, %s1463_s26  ;;  %s2362_s7 = int_to_ptr.vmem [resolvable:$true] %s1287_s7 }
  0x4b   : > { %328 = vmatpush1.bf16.msra.mxu0 %v1545_v4  ;;  %398 = vmatpush1.bf16.msra.mxu1 %v1545_v4  ;;  %vm470_vm9 = vmor %vm469_vm8, %vm466_vm7  ;;  %s1272_s14 = scalar_lea.sflag [#allocation7], %s1982_s6  ;;  %s1750_s9 = scalar_lea.vmem %s2362_s7, 1024 }
  0x4c   : > { %503 = vmatprep.subr.bf16.mxu0 %v485_v7  ;;  %p1751_p8 = scmp.ne.s32.totalorder %s2362_s7, %s1750_s9  ;;  %s1843_s28 = smov [#allocation10]  }
  0x4d   : > { %s1754_s12 = sshll.u32 %s1843_s28, 4  ;;  %s1755_s12 = int_to_ptr.vmem [resolvable:$false] %s1754_s12 }
  0x4e   : > { %1415 = vmatmul.mubr.msk.bf16.vlgmr.msra.gmra.mxu0 %vm309_vm0, %v288_v12  ;;  %1419 = vmatmul.mubr.msk.bf16.vlgmr.msra.gmra.mxu1 %vm309_vm0, %v1546_v51  ;;  %p1752_p0 = pnand %p1751_p8, %p1925_p9  ;;  %s1756_s16 = scalar_lea.vmem %s1755_s12, 2048 }
  0x4f   : > { %504 = vmatpush1.bf16.msra.mxu0 %v484_v13  ;;  %523 = vmatprep.mubr.bf16.mxu0 %v1842_v0  ;;  %p1757_p5 = scmp.lt.s32.totalorder %s2362_s7, %s1755_s12  ;;  %p1758_p6 = scmp.lt.s32.totalorder %s1756_s16, %s1750_s9 }
  0x50   : > { %505 = vmatprep.subr.bf16.mxu0 %v483_v14  ;;  %425 = vmatprep.mubr.bf16.mxu1 %v1842_v0  ;;  %p1753_p2 = pneg %p1752_p0 }
  0x51   : > { %p1759_p4 = por %p1758_p6, %p1757_p5 }
  0x53   : > { %506 = vmatpush1.bf16.msra.mxu0 %v482_v17  ;;  %p1760_p7 = pnand %p1759_p4, %p1753_p2 }
  0x56   : > { %1425 = vmatmul.mubr.msk.bf16.vlgmr.msra.gmra.mxu0 %vm309_vm0, %v486_v18  ;;  %1420 = vmatmul.mubr.msk.bf16.gmra.mxu1 %vm309_vm0, %v1547_v56 }
  0x57   : > { %660 = vmatprep.mubr.bf16.mxu0 %v1842_v0 }
 0x10e   : > { %v347_v19 = vpop.f32.mrf.mxu0 }
 0x10f   : > { %v1464_v20 = vpack.c.bf16 %v347_v19, %v347_v19 }
 0x110   : > { %v349_v21 = vpop.f32.mrf.mxu0 }
 0x111   : > { %v1465_v22 = vpack.c.bf16 %v349_v21, %v349_v21  ;;  %v623_v24 = vsel %vm621_vm1, %v1464_v20, 0 }
 0x112   : > { %v351_v23 = vpop.f32.mrf.mxu0 }
 0x113   : > { %1428 = vmatprep.subr.msk.bf16.mxu0 %vm621_vm1, %v1465_v22 }
 0x114   : > { %v352_v25 = vpop.f32.mrf.mxu0  ;;  %643 = vmatpush1.bf16.msra.mxu0 %v623_v24 }
 0x116   : > { %v525_v26 = vpop.f32.mrf.mxu0 }
 0x117   : > { %v532_v27 = vpack.c.bf16 %v525_v26, %v525_v26 }
 0x118   : > { %v527_v28 = vpop.f32.mrf.mxu0 }
 0x119   : > { %535 = vxpose.xlu0.c.b16.start.end [1/1] (short) %v532_v27, 128  ;;  %v533_v31 = vpack.c.bf16 %v527_v28, %v527_v28 }
 0x11a   : > { %v529_v29 = vpop.f32.mrf.mxu0 }
 0x11c   : > { %v530_v30 = vpop.f32.mrf.mxu0 }
 0x136   : > { %551 = vxpose.xlu0.c.b16.start.end [1/1] (short) %v533_v31, 128 }
 0x17b   : > { %v543_v32 = vpop.trf.xlu0 }
 0x17c   : > { %1429 = vmatmul.mubr.msk.bf16.vlgmr.msra.gmra.mxu0 %vm572_vm2, %v543_v32 }
 0x17d   : > { %670 = vmatprep.mubr.bf16.mxu0 %v1842_v0 }
 0x17f   : > { %v544_v33 = vpop.trf.xlu0 }
 0x183   : > { %v545_v34 = vpop.trf.xlu0 }
 0x184   : > { %1430 = vmatmul.mubr.msk.bf16.gmra.mxu0 %vm572_vm2, %v544_v33 }
 0x185   : > { %680 = vmatprep.mubr.bf16.mxu0 %v1842_v0 }
 0x187   : > { %v546_v35 = vpop.trf.xlu0 }
 0x18b   : > { %v547_v36 = vpop.trf.xlu0 }
 0x18c   : > { %1431 = vmatmul.mubr.msk.bf16.gmra.mxu0 %vm572_vm2, %v545_v34 }
 0x18d   : > { %690 = vmatprep.mubr.bf16.mxu0 %v1842_v0 }
 0x18f   : > { %v548_v37 = vpop.trf.xlu0 }
 0x193   : > { %v549_v38 = vpop.trf.xlu0 }
 0x194   : > { %1432 = vmatmul.mubr.msk.bf16.gmra.mxu0 %vm572_vm2, %v546_v35 }
 0x195   : > { %700 = vmatprep.mubr.bf16.mxu0 %v1842_v0 }
 0x197   : > { %v550_v39 = vpop.trf.xlu0 }
 0x19b   : > { %v559_v40 = vpop.trf.xlu0 }
 0x19c   : > { %1433 = vmatmul.mubr.msk.bf16.gmra.mxu0 %vm572_vm2, %v547_v36 }
 0x19d   : > { %710 = vmatprep.mubr.bf16.mxu0 %v1842_v0 }
 0x19f   : > { %v560_v41 = vpop.trf.xlu0 }
 0x1a3   : > { %v561_v42 = vpop.trf.xlu0 }
 0x1a4   : > { %1434 = vmatmul.mubr.msk.bf16.gmra.mxu0 %vm572_vm2, %v548_v37 }
 0x1a5   : > { %720 = vmatprep.mubr.bf16.mxu0 %v1842_v0 }
 0x1a7   : > { %v562_v43 = vpop.trf.xlu0 }
 0x1ab   : > { %v563_v44 = vpop.trf.xlu0 }
 0x1ac   : > { %1435 = vmatmul.mubr.msk.bf16.gmra.mxu0 %vm572_vm2, %v549_v38 }
 0x1ad   : > { %730 = vmatprep.mubr.bf16.mxu0 %v1842_v0 }
 0x1af   : > { %v564_v45 = vpop.trf.xlu0 }
 0x1b3   : > { %v565_v46 = vpop.trf.xlu0 }
 0x1b4   : > { %1436 = vmatmul.mubr.msk.bf16.gmra.mxu0 %vm572_vm2, %v550_v39 }
 0x1b5   : > { %740 = vmatprep.mubr.bf16.mxu0 %v1842_v0 }
 0x1b7   : > { %v566_v47 = vpop.trf.xlu0 }
 0x1bc   : > { %1437 = vmatmul.mubr.msk.bf16.gmra.mxu0 %vm572_vm2, %v559_v40 }
 0x1bd   : > { %750 = vmatprep.mubr.bf16.mxu0 %v1842_v0 }
 0x1c4   : > { %1438 = vmatmul.mubr.msk.bf16.gmra.mxu0 %vm572_vm2, %v560_v41 }
 0x1c5   : > { %760 = vmatprep.mubr.bf16.mxu0 %v1842_v0 }
 0x1cc   : > { %1439 = vmatmul.mubr.msk.bf16.gmra.mxu0 %vm572_vm2, %v561_v42 }
 0x1cd   : > { %770 = vmatprep.mubr.bf16.mxu0 %v1842_v0 }
 0x1d4   : > { %1440 = vmatmul.mubr.msk.bf16.gmra.mxu0 %vm572_vm2, %v562_v43 }
 0x1d5   : > { %780 = vmatprep.mubr.bf16.mxu0 %v1842_v0 }
 0x1dc   : > { %1441 = vmatmul.mubr.msk.bf16.gmra.mxu0 %vm572_vm2, %v563_v44 }
 0x1dd   : > { %790 = vmatprep.mubr.bf16.mxu0 %v1842_v0 }
 0x1e4   : > { %1442 = vmatmul.mubr.msk.bf16.gmra.mxu0 %vm572_vm2, %v564_v45 }
 0x1e5   : > { %800 = vmatprep.mubr.bf16.mxu0 %v1842_v0 }
 0x1ec   : > { %1443 = vmatmul.mubr.msk.bf16.gmra.mxu0 %vm572_vm2, %v565_v46 }
 0x1ed   : > { %810 = vmatprep.mubr.bf16.mxu0 %v1842_v0 }
 0x1f4   : > { %1444 = vmatmul.mubr.msk.bf16.gmra.mxu0 %vm572_vm2, %v566_v47 }
 0x23c   : > { %v2051_v48 = vpop.f32.mrf.mxu0 }
 0x23e   : > { %v2053_v49 = vpop.f32.mrf.mxu0 }
 0x240   : > { %v2055_v50 = vpop.f32.mrf.mxu0 }
 0x242   : > { %v2060_v52 = vpop.f32.mrf.mxu0 }
 0x244   : > { %v2063_v53 = vpop.f32.mrf.mxu0 }
 0x246   : > { %v2066_v54 = vpop.f32.mrf.mxu0 }
 0x248   : > { %v2068_v55 = vpop.f32.mrf.mxu0 }
 0x24a   : > { %v2073_v57 = vpop.f32.mrf.mxu0 }
 0x24c   : > { %v2076_v58 = vpop.f32.mrf.mxu0 }
 0x24e   : > { %v2078_v59 = vpop.f32.mrf.mxu0 }
 0x24f   : > { %v833_v44 = vmax.f32 %v2076_v58, %v2078_v59 }
 0x250   : > { %v2080_v60 = vpop.f32.mrf.mxu0 }
 0x252   : > { %v2082_v61 = vpop.f32.mrf.mxu0 }
 0x253   : > { %v836_v47 = vmax.f32 %v2080_v60, %v2082_v61 }
 0x254   : > { %v2084_v62 = vpop.f32.mrf.mxu0 }
 0x256   : > { %v2086_v63 = vpop.f32.mrf.mxu0 }
 0x257   : > { %v839_v41 = vmax.f32 %v2084_v62, %v2086_v63 }
 0x258   : > { %v2088_v0 = vpop.f32.mrf.mxu0 }
 0x25a   : > { %v2090_v1 = vpop.f32.mrf.mxu0 }
 0x25b   : > { %v842_v2 = vmax.f32 %v2088_v0, %v2090_v1 }
 0x25c   : > { %v2094_v3 = vpop.f32.mrf.mxu0 }
 0x25d   : > { %843 = vmax.xlane.f32.xlu0 %v842_v2  ;;  %v827_v2 = vmax.f32 %v2063_v53, %v2066_v54 }
 0x25e   : > { %v2096_v4 = vpop.f32.mrf.mxu0 }
 0x25f   : > { %v845_v35 = vmax.f32 %v2094_v3, %v2096_v4 }
 0x260   : > { %v2098_v5 = vpop.f32.mrf.mxu0 }
 0x262   : > { %v2100_v6 = vpop.f32.mrf.mxu0 }
 0x263   : > { %v848_v38 = vmax.f32 %v2098_v5, %v2100_v6 }
 0x264   : > { %v2102_v7 = vpop.f32.mrf.mxu0 }
 0x266   : > { %v2104_v8 = vpop.f32.mrf.mxu0 }
 0x267   : > { %v851_v29 = vmax.f32 %v2102_v7, %v2104_v8 }
 0x268   : > { %v2106_v9 = vpop.f32.mrf.mxu0 }
 0x26a   : > { %v2108_v10 = vpop.f32.mrf.mxu0 }
 0x26b   : > { %v854_v32 = vmax.f32 %v2106_v9, %v2108_v10 }
 0x26c   : > { %v2110_v11 = vpop.f32.mrf.mxu0 }
 0x26e   : > { %v2112_v12 = vpop.f32.mrf.mxu0 }
 0x26f   : > { %v857_v23 = vmax.f32 %v2110_v11, %v2112_v12 }
 0x270   : > { %v2114_v13 = vpop.f32.mrf.mxu0 }
 0x272   : > { %v2116_v14 = vpop.f32.mrf.mxu0 }
 0x273   : > { %v860_v26 = vmax.f32 %v2114_v13, %v2116_v14 }
 0x274   : > { %v2118_v15 = vpop.f32.mrf.mxu0 }
 0x276   : > { %v2120_v16 = vpop.f32.mrf.mxu0 }
 0x277   : > { %v863_v17 = vmax.f32 %v2118_v15, %v2120_v16 }
 0x278   : > { %v2124_v18 = vpop.f32.mrf.mxu0 }
 0x279   : > { %864 = vmax.xlane.f32.xlu1 %v863_v17 }
 0x27a   : > { %v2126_v19 = vpop.f32.mrf.mxu0 }
 0x27b   : > { %v866_v20 = vmax.f32 %v2124_v18, %v2126_v19 }
 0x27c   : > { %v2130_v21 = vpop.f32.mrf.mxu0 }
 0x27d   : > { %2446 = vst [vmem:[#allocation14_spill] sm:$0xff] %v2130_v21  ;;  %867 = vmax.xlane.f32.xlu1 %v866_v20 }
 0x27e   : > { %v2132_v22 = vpop.f32.mrf.mxu0 }
 0x27f   : > { %2447 = vst [vmem:[#allocation15_spill] sm:$0xff] %v2132_v22 }
 0x280   : > { %v2136_v24 = vpop.f32.mrf.mxu0 }
 0x281   : > { %2448 = vst [vmem:[#allocation16_spill] sm:$0xff] %v2136_v24  ;;  %858 = vmax.xlane.f32.xlu1 %v857_v23  ;;  %v830_v23 = vmax.f32 %v2068_v55, %v2073_v57 }
 0x282   : > { %v2138_v25 = vpop.f32.mrf.mxu0 }
 0x283   : > { %2449 = vst [vmem:[#allocation17_spill] sm:$0xff] %v2138_v25 }
 0x284   : > { %v2142_v27 = vpop.f32.mrf.mxu0 }
 0x285   : > { %2450 = vst [vmem:[#allocation18_spill] sm:$0xff] %v2142_v27  ;;  %861 = vmax.xlane.f32.xlu1 %v860_v26 }
 0x286   : > { %v2144_v28 = vpop.f32.mrf.mxu0 }
 0x287   : > { %2451 = vst [vmem:[#allocation19_spill] sm:$0xff] %v2144_v28 }
 0x288   : > { %v2148_v30 = vpop.f32.mrf.mxu0 }
 0x289   : > { %2452 = vst [vmem:[#allocation20_spill] sm:$0xff] %v2148_v30  ;;  %852 = vmax.xlane.f32.xlu1 %v851_v29 }
 0x28a   : > { %v2150_v31 = vpop.f32.mrf.mxu0 }
 0x28b   : > { %2453 = vst [vmem:[#allocation21_spill] sm:$0xff] %v2150_v31 }
 0x28c   : > { %v2154_v33 = vpop.f32.mrf.mxu0 }
 0x28d   : > { %2454 = vst [vmem:[#allocation22_spill] sm:$0xff] %v2154_v33  ;;  %855 = vmax.xlane.f32.xlu1 %v854_v32 }
 0x28e   : > { %v2156_v34 = vpop.f32.mrf.mxu0 }
 0x28f   : > { %2455 = vst [vmem:[#allocation23_spill] sm:$0xff] %v2156_v34 }
 0x290   : > { %v2160_v36 = vpop.f32.mrf.mxu0 }
 0x291   : > { %2456 = vst [vmem:[#allocation24_spill] sm:$0xff] %v2160_v36  ;;  %846 = vmax.xlane.f32.xlu1 %v845_v35  ;;  %v821_v35 = vmax.f32 %v2051_v48, %v2053_v49 }
 0x292   : > { %v2162_v37 = vpop.f32.mrf.mxu0 }
 0x294   : > { %v2166_v39 = vpop.f32.mrf.mxu0 }
 0x295   : > { %2457 = vst [vmem:[#allocation25_spill] sm:$0xff] %v2166_v39  ;;  %849 = vmax.xlane.f32.xlu1 %v848_v38 }
 0x296   : > { %v2168_v40 = vpop.f32.mrf.mxu0 }
 0x297   : > { %2458 = vst [vmem:[#allocation26_spill] sm:$0xff] %v2168_v40 }
 0x298   : > { %v2172_v42 = vpop.f32.mrf.mxu0 }
 0x299   : > { %840 = vmax.xlane.f32.xlu1 %v839_v41 }
 0x29a   : > { %v2174_v43 = vpop.f32.mrf.mxu0 }
 0x29c   : > { %v2178_v45 = vpop.f32.mrf.mxu0 }
 0x29d   : > { %2459 = vst [vmem:[#allocation27_spill] sm:$0xff] %v2178_v45  ;;  %834 = vmax.xlane.f32.xlu1 %v833_v44 }
 0x29e   : > { %v2180_v46 = vpop.f32.mrf.mxu0 }
 0x29f   : > { %2460 = vst [vmem:[#allocation28_spill] sm:$0xff] %v2180_v46  ;;  %v893_v38 = vmax.f32 %v2178_v45, %v2180_v46  ;;  %v881_v45 = vmax.f32 %v2154_v33, %v2156_v34 }
 0x2a0   : > { %v2184_v51 = vpop.f32.mrf.mxu0 }
 0x2a1   : > { %837 = vmax.xlane.f32.xlu1 %v836_v47  ;;  %v824_v47 = vmax.f32 %v2055_v50, %v2060_v52 }
 0x2a2   : > { %v2186_v56 = vpop.f32.mrf.mxu0 }
 0x2a4   : > { %v2190_v17 = vpop.f32.mrf.mxu0 }
 0x2a5   : > { %828 = vmax.xlane.f32.xlu1 %v827_v2  ;;  %v887_v2 = vmax.f32 %v2166_v39, %v2168_v40 }
 0x2a6   : > { %v2192_v20 = vpop.f32.mrf.mxu0 }
 0x2a7   : > { %v899_v26 = vmax.f32 %v2190_v17, %v2192_v20 }
 0x2a8   : > { %v2198_v29 = vpop.f32.mrf.mxu0 }
 0x2a9   : > { %831 = vmax.xlane.f32.xlu1 %v830_v23  ;;  %900 = vmax.xlane.f32.xlu0 %v899_v26 }
 0x2aa   : > { %v2200_v32 = vpop.f32.mrf.mxu0 }
 0x2ac   : > { %v2206_v41 = vpop.f32.mrf.mxu0 }
 0x2ad   : > { %822 = vmax.xlane.f32.xlu1 %v821_v35  ;;  %894 = vmax.xlane.f32.xlu0 %v893_v38  ;;  %v875_v38 = vmax.f32 %v2142_v27, %v2144_v28 }
 0x2ae   : > { %v2208_v44 = vpop.f32.mrf.mxu0 }
 0x2af   : > { %v905_v27 = vmax.f32 %v2206_v41, %v2208_v44 }
 0x2b0   : > { %v2214_v23 = vpop.f32.mrf.mxu0 }
 0x2b1   : > { %825 = vmax.xlane.f32.xlu1 %v824_v47  ;;  %888 = vmax.xlane.f32.xlu0 %v887_v2 }
 0x2b2   : > { %v2216_v26 = vpop.f32.mrf.mxu0 }
 0x2b3   : > { %v908_v28 = vmax.f32 %v2214_v23, %v2216_v26 }
 0x2b4   : > { %v2220_v46 = vpop.f32.mrf.mxu0 }
 0x2b5   : > { %882 = vmax.xlane.f32.xlu0 %v881_v45  ;;  %v869_v45 = vmax.f32 %v2130_v21, %v2132_v22  ;;  %v2254_v22 = vpop.f32.mrf.mxu1 }
 0x2b6   : > { %v2222_v35 = vpop.f32.mrf.mxu0 }
 0x2b7   : > { %v911_v39 = vmax.f32 %v2220_v46, %v2222_v35  ;;  %v419_v33 = vpop.f32.mrf.mxu1 }
 0x2b8   : > { %v2228_v40 = vpop.f32.mrf.mxu0 }
 0x2b9   : > { %876 = vmax.xlane.f32.xlu0 %v875_v38  ;;  %912 = vmax.xlane.f32.xlu1 %v911_v39  ;;  %v902_v39 = vmax.f32 %v2198_v29, %v2200_v32  ;;  %v896_v38 = vmax.f32 %v2184_v51, %v2186_v56 }
 0x2ba   : > { %v2230_v47 = vpop.f32.mrf.mxu0 }
 0x2bb   : > { %v914_v2 = vmax.f32 %v2228_v40, %v2230_v47 }
 0x2bd   : > { %870 = vmax.xlane.f32.xlu0 %v869_v45  ;;  %915 = vmax.xlane.f32.xlu1 %v914_v2  ;;  %v890_v45 = vmax.f32 %v2172_v42, %v2174_v43  ;;  %v884_v2 = vmax.f32 %v2160_v36, %v2162_v37 }
 0x2c1   : > { %906 = vmax.xlane.f32.xlu1 %v905_v27  ;;  %v878_v27 = vmax.f32 %v2148_v30, %v2150_v31 }
 0x2c5   : > { %909 = vmax.xlane.f32.xlu1 %v908_v28  ;;  %v872_v28 = vmax.f32 %v2136_v24, %v2138_v25 }
 0x2c9   : > { %903 = vmax.xlane.f32.xlu1 %v902_v39 }
 0x2cd   : > { %897 = vmax.xlane.f32.xlu1 %v896_v38 }
 0x2d1   : > { %891 = vmax.xlane.f32.xlu1 %v890_v45 }
 0x2d5   : > { %885 = vmax.xlane.f32.xlu1 %v884_v2 }
 0x2d9   : > { %879 = vmax.xlane.f32.xlu1 %v878_v27  ;;  %v2258_v27 = vpop.f32.mrf.mxu1 }
 0x2dd   : > { %873 = vmax.xlane.f32.xlu1 %v872_v28 }
 0x302   : > { %v865_v39 = vpop.xlane.xlu1 %864 }
 0x303   : > { %v945_v21 = vsub.f32 %v2118_v15, %v865_v39  ;;  %v946_v38 = vsub.f32 %v2120_v16, %v865_v39  ;;  %v423_v15 = vpop.f32.mrf.mxu1 }
 0x305   : > { %v1037_v45 = vmul.f32 1.442695, %v945_v21  ;;  %v1039_v34 = vmul.f32 1.442695, %v946_v38  ;;  %v2262_v39 = vpop.f32.mrf.mxu1 }
 0x306   : > { %v868_v36 = vpop.xlane.xlu1 %867 }
 0x307   : > { %v947_v2 = vsub.f32 %v2124_v18, %v868_v36  ;;  %v948_v30 = vsub.f32 %v2126_v19, %v868_v36  ;;  %1550 = vpow2.f32 %v1037_v45  ;;  %v2264_v19 = vpop.f32.mrf.mxu1 }
 0x308   : > { %1552 = vpow2.f32 %v1039_v34 }
 0x309   : > { %v1041_v24 = vmul.f32 1.442695, %v947_v2  ;;  %v1043_v28 = vmul.f32 1.442695, %v948_v30  ;;  %v2268_v34 = vpop.f32.mrf.mxu1 }
 0x30a   : > { %v859_v25 = vpop.xlane.xlu1 %858 }
 0x30b   : > { %1554 = vpow2.f32 %v1041_v24  ;;  %v941_v16 = vsub.f32 %v2110_v11, %v859_v25  ;;  %v942_v21 = vsub.f32 %v2112_v12, %v859_v25  ;;  %v2270_v12 = vpop.f32.mrf.mxu1 }
 0x30c   : > { %1556 = vpow2.f32 %v1043_v28 }
 0x30d   : > { %v1029_v38 = vmul.f32 1.442695, %v941_v16  ;;  %v1031_v18 = vmul.f32 1.442695, %v942_v21 }
 0x30e   : > { %v862_v31 = vpop.xlane.xlu1 %861 }
 0x30f   : > { %v943_v36 = vsub.f32 %v2114_v13, %v862_v31  ;;  %v944_v30 = vsub.f32 %v2116_v14, %v862_v31  ;;  %1558 = vpow2.f32 %v1029_v38  ;;  %v1690_v13 = vpack.c.bf16 %v2258_v27, %v2254_v22 }
 0x310   : > { %1560 = vpow2.f32 %v1031_v18  ;;  %v1691_v14 = vpack.c.bf16 %v423_v15, %v419_v33 }
 0x311   : > { %v1033_v24 = vmul.f32 1.442695, %v943_v36  ;;  %v1035_v45 = vmul.f32 1.442695, %v944_v30 }
 0x312   : > { %v853_v11 = vpop.xlane.xlu1 %852  ;;  %1205 = vmatprep.mubr.bf16.mxu1 %v1691_v14 }
 0x313   : > { %1562 = vpow2.f32 %v1033_v24  ;;  %v937_v25 = vsub.f32 %v2102_v7, %v853_v11  ;;  %v938_v2 = vsub.f32 %v2104_v8, %v853_v11 }
 0x314   : > { %1564 = vpow2.f32 %v1035_v45  ;;  %v1551_v31 = vpop.eup %1550 }
 0x315   : > { %v1021_v28 = vmul.f32 1.442695, %v937_v25  ;;  %v1023_v16 = vmul.f32 1.442695, %v938_v2  ;;  %v1553_v38 = vpop.eup %1552  ;;  %v844_v2 = vpop.xlane.xlu0 %843 }
 0x316   : > { %v856_v21 = vpop.xlane.xlu1 %855 }
 0x317   : > { %v939_v18 = vsub.f32 %v2106_v9, %v856_v21  ;;  %v940_v36 = vsub.f32 %v2108_v10, %v856_v21  ;;  %1566 = vpow2.f32 %v1021_v28  ;;  %v1692_v10 = vpack.c.bf16 %v2270_v12, %v2264_v19 }
 0x318   : > { %v1555_v30 = vpop.eup %1554  ;;  %1568 = vpow2.f32 %v1023_v16  ;;  %v1693_v28 = vpack.c.bf16 %v2268_v34, %v2262_v39  ;;  %v1239_v39 = vlaneseq }
 0x319   : > { %v1557_v24 = vpop.eup %1556  ;;  %v1025_v7 = vmul.f32 1.442695, %v939_v18  ;;  %v1027_v8 = vmul.f32 1.442695, %v940_v36  ;;  %v1123_v45 = vpack.c.bf16 %v1555_v30, %v1551_v31 }
 0x31a   : > { %v847_v11 = vpop.xlane.xlu1 %846  ;;  %v1124_v25 = vpack.c.bf16 %v1557_v24, %v1553_v38  ;;  %v932_v38 = vsub.f32 %v2090_v1, %v844_v2 }
 0x31b   : > { %1570 = vpow2.f32 %v1025_v7  ;;  %v933_v33 = vsub.f32 %v2094_v3, %v847_v11  ;;  %v934_v15 = vsub.f32 %v2096_v4, %v847_v11 }
 0x31c   : > { %1572 = vpow2.f32 %v1027_v8  ;;  %1173 = vmatprep.subr.bf16.mxu1 %v1124_v25  ;;  %v1559_v14 = vpop.eup %1558  ;;  %v471_v8 = vld [vmem:[#allocation3 + $0x18] sm:$0x11]  ;;  %v1011_v1 = vmul.f32 1.442695, %v932_v38  ;;  %v931_v25 = vsub.f32 %v2088_v0, %v844_v2 }
 0x31d   : > { %v1013_v9 = vmul.f32 1.442695, %v933_v33  ;;  %1174 = vmatpush1.bf16.xpose.msra.mxu1 %v1123_v45  ;;  %v1015_v31 = vmul.f32 1.442695, %v934_v15  ;;  %v1561_v21 = vpop.eup %1560  ;;  %v472_v33 = vsel %vm470_vm9, 1065369472, %v471_v8 }
 0x31e   : > { %v850_v16 = vpop.xlane.xlu1 %849  ;;  %473 = vst [vmem:[#allocation3 + $0x18] sm:$0x11] %v472_v33 }
 0x31f   : > { %v935_v3 = vsub.f32 %v2098_v5, %v850_v16  ;;  %v936_v4 = vsub.f32 %v2100_v6, %v850_v16  ;;  %1574 = vpow2.f32 %v1013_v9 }
 0x320   : > { %v1563_v18 = vpop.eup %1562  ;;  %1576 = vpow2.f32 %v1015_v31 }
 0x321   : > { %v1565_v36 = vpop.eup %1564  ;;  %v1017_v30 = vmul.f32 1.442695, %v935_v3  ;;  %v1019_v24 = vmul.f32 1.442695, %v936_v4  ;;  %v1121_v7 = vpack.c.bf16 %v1563_v18, %v1559_v14 }
 0x322   : > { %v841_v45 = vpop.xlane.xlu1 %840  ;;  %v1122_v11 = vpack.c.bf16 %v1565_v36, %v1561_v21 }
 0x323   : > { %1578 = vpow2.f32 %v1017_v30  ;;  %v929_v5 = vsub.f32 %v2084_v62, %v841_v45  ;;  %v930_v6 = vsub.f32 %v2086_v63, %v841_v45  ;;  %v1009_v62 = vmul.f32 1.442695, %v931_v25 }
 0x324   : > { %1580 = vpow2.f32 %v1019_v24  ;;  %1175 = vmatprep.subr.bf16.mxu1 %v1122_v11  ;;  %v1567_v9 = vpop.eup %1566 }
 0x325   : > { %v1007_v15 = vmul.f32 1.442695, %v930_v6  ;;  %1176 = vmatpush1.bf16.xpose.msra.mxu1 %v1121_v7  ;;  %v1005_v14 = vmul.f32 1.442695, %v929_v5  ;;  %v1569_v16 = vpop.eup %1568  ;;  %1582 = vpow2.f32 %v1011_v1 }
 0x326   : > { %v835_v31 = vpop.xlane.xlu1 %834 }
 0x327   : > { %v926_v21 = vsub.f32 %v2078_v59, %v835_v31  ;;  %1584 = vpow2.f32 %v1007_v15  ;;  %v925_v30 = vsub.f32 %v2076_v58, %v835_v31 }
 0x328   : > { %v1571_v38 = vpop.eup %1570  ;;  %1586 = vpow2.f32 %v1005_v14 }
 0x329   : > { %v1573_v63 = vpop.eup %1572  ;;  %v1119_v3 = vpack.c.bf16 %v1571_v38, %v1567_v9  ;;  %v999_v4 = vmul.f32 1.442695, %v926_v21  ;;  %1588 = vpow2.f32 %v1009_v62  ;;  %v997_v6 = vmul.f32 1.442695, %v925_v30 }
 0x32a   : > { %v838_v0 = vpop.xlane.xlu1 %837  ;;  %v1120_v2 = vpack.c.bf16 %v1573_v63, %v1569_v16 }
 0x32b   : > { %v927_v18 = vsub.f32 %v2080_v60, %v838_v0  ;;  %v928_v36 = vsub.f32 %v2082_v61, %v838_v0  ;;  %1590 = vpow2.f32 %v999_v4 }
 0x32c   : > { %1177 = vmatprep.subr.bf16.mxu1 %v1120_v2  ;;  %v1575_v59 = vpop.eup %1574 }
 0x32d   : > { %v1003_v24 = vmul.f32 1.442695, %v928_v36  ;;  %1178 = vmatpush1.bf16.xpose.msra.mxu1 %v1119_v3  ;;  %v1577_v8 = vpop.eup %1576  ;;  %v1001_v45 = vmul.f32 1.442695, %v927_v18 }
 0x32e   : > { %v829_v7 = vpop.xlane.xlu1 %828 }
 0x32f   : > { %v922_v11 = vsub.f32 %v2066_v54, %v829_v7  ;;  %1592 = vpow2.f32 %v1003_v24  ;;  %v921_v31 = vsub.f32 %v2063_v53, %v829_v7 }
 0x330   : > { %v1579_v1 = vpop.eup %1578  ;;  %1594 = vpow2.f32 %v1001_v45 }
 0x331   : > { %v1581_v5 = vpop.eup %1580  ;;  %v1117_v60 = vpack.c.bf16 %v1579_v1, %v1575_v59  ;;  %v991_v33 = vmul.f32 1.442695, %v922_v11  ;;  %1596 = vpow2.f32 %v997_v6  ;;  %v989_v3 = vmul.f32 1.442695, %v921_v31 }
 0x332   : > { %v832_v25 = vpop.xlane.xlu1 %831  ;;  %v1118_v61 = vpack.c.bf16 %v1581_v5, %v1577_v8  ;;  %v1583_v9 = vpop.eup %1582 }
 0x333   : > { %v923_v58 = vsub.f32 %v2068_v55, %v832_v25  ;;  %v924_v15 = vsub.f32 %v2073_v57, %v832_v25  ;;  %1598 = vpow2.f32 %v991_v33 }
 0x334   : > { %1179 = vmatprep.subr.bf16.mxu1 %v1118_v61  ;;  %v1585_v14 = vpop.eup %1584 }
 0x335   : > { %v995_v54 = vmul.f32 1.442695, %v924_v15  ;;  %1180 = vmatpush1.bf16.xpose.msra.mxu1 %v1117_v60  ;;  %v1116_v21 = vpack.c.bf16 %v1583_v9, %v1585_v14  ;;  %v1587_v38 = vpop.eup %1586  ;;  %v993_v62 = vmul.f32 1.442695, %v923_v58 }
 0x336   : > { %v823_v16 = vpop.xlane.xlu1 %822  ;;  %v1589_v55 = vpop.eup %1588 }
 0x337   : > { %v918_v63 = vsub.f32 %v2053_v49, %v823_v16  ;;  %1600 = vpow2.f32 %v995_v54  ;;  %1181 = vmatprep.subr.bf16.mxu1 %v1116_v21  ;;  %v1115_v0 = vpack.c.bf16 %v1589_v55, %v1587_v38  ;;  %v917_v30 = vsub.f32 %v2051_v48, %v823_v16  ;;  %v901_v21 = vpop.xlane.xlu0 %900 }
 0x338   : > { %1602 = vpow2.f32 %v993_v62  ;;  %v1591_v18 = vpop.eup %1590  ;;  %v970_v55 = vsub.f32 %v2192_v20, %v901_v21 }
 0x339   : > { %v983_v2 = vmul.f32 1.442695, %v918_v63  ;;  %1604 = vpow2.f32 %v989_v3  ;;  %v981_v8 = vmul.f32 1.442695, %v917_v30 }
 0x33a   : > { %v826_v57 = vpop.xlane.xlu1 %825 }
 0x33b   : > { %v919_v4 = vsub.f32 %v2055_v50, %v826_v57  ;;  %v920_v53 = vsub.f32 %v2060_v52, %v826_v57  ;;  %1606 = vpow2.f32 %v983_v2 }
 0x33c   : > { %v1593_v36 = vpop.eup %1592 }
 0x33d   : > { %v987_v24 = vmul.f32 1.442695, %v920_v53  ;;  %1182 = vmatpush1.bf16.xpose.msra.mxu1 %v1115_v0  ;;  %v1114_v49 = vpack.c.bf16 %v1593_v36, %v1591_v18  ;;  %v985_v59 = vmul.f32 1.442695, %v919_v4  ;;  %v1595_v7 = vpop.eup %1594 }
 0x33e   : > { %v1597_v45 = vpop.eup %1596 }
 0x33f   : > { %1608 = vpow2.f32 %v987_v24  ;;  %1183 = vmatprep.subr.bf16.mxu1 %v1114_v49  ;;  %v1113_v52 = vpack.c.bf16 %v1595_v7, %v1597_v45  ;;  %v895_v24 = vpop.xlane.xlu0 %894  ;;  %v969_v49 = vsub.f32 %v2190_v17, %v901_v21 }
 0x340   : > { %1610 = vpow2.f32 %v985_v59  ;;  %v1599_v1 = vpop.eup %1598 }
 0x341   : > { %1612 = vpow2.f32 %v981_v8  ;;  %v2461_v8 = vld [vmem:[#allocation28_spill] sm:$0xff] }
 0x342   : > { %v913_v11 = vpop.xlane.xlu1 %912  ;;  %v966_v45 = vsub.f32 %v2461_v8, %v895_v24 }
 0x343   : > { %v977_v50 = vsub.f32 %v2220_v46, %v913_v11  ;;  %v978_v5 = vsub.f32 %v2222_v35, %v913_v11 }
 0x344   : > { %v1601_v6 = vpop.eup %1600 }
 0x345   : > { %1184 = vmatpush1.bf16.xpose.msra.mxu1 %v1113_v52  ;;  %v1112_v60 = vpack.c.bf16 %v1601_v6, %v1599_v1  ;;  %v1101_v25 = vmul.f32 1.442695, %v977_v50  ;;  %v1603_v33 = vpop.eup %1602  ;;  %v1103_v58 = vmul.f32 1.442695, %v978_v5  ;;  %v1085_v5 = vmul.f32 1.442695, %v969_v49 }
 0x346   : > { %v916_v48 = vpop.xlane.xlu1 %915  ;;  %v1605_v14 = vpop.eup %1604 }
 0x347   : > { %v979_v61 = vsub.f32 %v2228_v40, %v916_v48  ;;  %v980_v15 = vsub.f32 %v2230_v47, %v916_v48  ;;  %1185 = vmatprep.subr.bf16.mxu1 %v1112_v60  ;;  %1614 = vpow2.f32 %v1101_v25  ;;  %v1111_v54 = vpack.c.bf16 %v1603_v33, %v1605_v14  ;;  %v889_v25 = vpop.xlane.xlu0 %888  ;;  %v2462_v33 = vld [vmem:[#allocation27_spill] sm:$0xff] }
 0x348   : > { %v1607_v16 = vpop.eup %1606  ;;  %1616 = vpow2.f32 %v1103_v58  ;;  %v1079_v48 = vmul.f32 1.442695, %v966_v45  ;;  %v965_v58 = vsub.f32 %v2462_v33, %v895_v24  ;;  %v2468_v45 = vld [vmem:[#allocation22_spill] sm:$0xff] }
 0x349   : > { %v1105_v9 = vmul.f32 1.442695, %v979_v61  ;;  %v1107_v46 = vmul.f32 1.442695, %v980_v15 }
 0x34a   : > { %v907_v31 = vpop.xlane.xlu1 %906  ;;  %v1077_v21 = vmul.f32 1.442695, %v965_v58 }
 0x34b   : > { %v974_v35 = vsub.f32 %v2208_v44, %v907_v31  ;;  %1618 = vpow2.f32 %v1105_v9  ;;  %v973_v40 = vsub.f32 %v2206_v41, %v907_v31  ;;  %v1087_v41 = vmul.f32 1.442695, %v970_v55  ;;  %v2463_v9 = vld [vmem:[#allocation26_spill] sm:$0xff] }
 0x34c   : > { %v1609_v38 = vpop.eup %1608  ;;  %1620 = vpow2.f32 %v1107_v46  ;;  %v962_v14 = vsub.f32 %v2463_v9, %v889_v25 }
 0x34d   : > { %1186 = vmatpush1.bf16.xpose.msra.mxu1 %v1111_v54  ;;  %v1095_v62 = vmul.f32 1.442695, %v974_v35  ;;  %v1110_v63 = vpack.c.bf16 %v1609_v38, %v1607_v16  ;;  %v1611_v44 = vpop.eup %1610  ;;  %v1093_v0 = vmul.f32 1.442695, %v973_v40 }
 0x34e   : > { %v910_v47 = vpop.xlane.xlu1 %909  ;;  %v1613_v53 = vpop.eup %1612 }
 0x34f   : > { %v975_v3 = vsub.f32 %v2214_v23, %v910_v47  ;;  %v976_v57 = vsub.f32 %v2216_v26, %v910_v47  ;;  %1187 = vmatprep.subr.bf16.mxu1 %v1110_v63  ;;  %1622 = vpow2.f32 %v1095_v62  ;;  %v1109_v30 = vpack.c.bf16 %v1611_v44, %v1613_v53  ;;  %v883_v47 = vpop.xlane.xlu0 %882 }
 0x351   : > { %v1097_v2 = vmul.f32 1.442695, %v975_v3  ;;  %v1099_v4 = vmul.f32 1.442695, %v976_v57  ;;  %v2464_v57 = vld [vmem:[#allocation25_spill] sm:$0xff] }
 0x352   : > { %v904_v18 = vpop.xlane.xlu1 %903  ;;  %v961_v44 = vsub.f32 %v2464_v57, %v889_v25 }
 0x353   : > { %1624 = vpow2.f32 %v1097_v2  ;;  %v972_v36 = vsub.f32 %v2200_v32, %v904_v18  ;;  %v971_v20 = vsub.f32 %v2198_v29, %v904_v18 }
 0x354   : > { %1626 = vpow2.f32 %v1099_v4  ;;  %v1615_v7 = vpop.eup %1614 }
 0x355   : > { %1628 = vpow2.f32 %v1093_v0  ;;  %v1091_v23 = vmul.f32 1.442695, %v972_v36  ;;  %1188 = vmatpush1.bf16.xpose.msra.mxu1 %v1109_v30  ;;  %v1617_v11 = vpop.eup %1616  ;;  %v1089_v32 = vmul.f32 1.442695, %v971_v20  ;;  %v2465_v0 = vld [vmem:[#allocation23_spill] sm:$0xff] }
 0x356   : > { %v898_v26 = vpop.xlane.xlu1 %897  ;;  %1630 = vpow2.f32 %v1087_v41  ;;  %v958_v2 = vsub.f32 %v2465_v0, %v883_v47  ;;  %v1069_v36 = vmul.f32 1.442695, %v961_v44  ;;  %v2475_v44 = vld [vmem:[#allocation14_spill] sm:$0xff] }
 0x357   : > { %v968_v59 = vsub.f32 %v2186_v56, %v898_v26  ;;  %1632 = vpow2.f32 %v1091_v23  ;;  %v967_v17 = vsub.f32 %v2184_v51, %v898_v26  ;;  %v877_v23 = vpop.xlane.xlu0 %876 }
 0x358   : > { %v1619_v50 = vpop.eup %1618  ;;  %1634 = vpow2.f32 %v1089_v32  ;;  %v2469_v32 = vld [vmem:[#allocation19_spill] sm:$0xff] }
 0x359   : > { %v1083_v52 = vmul.f32 1.442695, %v968_v59  ;;  %v1621_v1 = vpop.eup %1620  ;;  %v1139_v29 = vpack.c.bf16 %v1619_v50, %v1615_v7  ;;  %v1081_v31 = vmul.f32 1.442695, %v967_v17  ;;  %v2467_v59 = vld [vmem:[#allocation21_spill] sm:$0xff]  ;;  %v954_v50 = vsub.f32 %v2469_v32, %v877_v23 }
 0x35a   : > { %v892_v6 = vpop.xlane.xlu1 %891  ;;  %v1140_v60 = vpack.c.bf16 %v1621_v1, %v1617_v11  ;;  %v957_v11 = vsub.f32 %v2468_v45, %v883_v47  ;;  %v1145_v45 = vld [vmem:[#allocation3 + $0x18] sm:$0x11] }
 0x35b   : > { %1636 = vpow2.f32 %v1083_v52  ;;  %v964_v56 = vsub.f32 %v2174_v43, %v892_v6  ;;  %v1071_v43 = vmul.f32 1.442695, %v962_v14  ;;  %v963_v63 = vsub.f32 %v2172_v42, %v892_v6 }
 0x35c   : > { %1189 = vmatprep.subr.bf16.mxu1 %v1140_v60  ;;  %v1623_v61 = vpop.eup %1622  ;;  %1638 = vpow2.f32 %v1085_v5  ;;  %v1063_v42 = vmul.f32 1.442695, %v958_v2  ;;  %v1055_v25 = vmul.f32 1.442695, %v954_v50  ;;  %v1449_v32 = vcombine.low %v1145_v45, %v1145_v45 }
 0x35d   : > { %1190 = vmatpush2.bf16.xpose.msra.mxu1 %v1139_v29  ;;  %1640 = vpow2.f32 %v1079_v48  ;;  %v1075_v54 = vmul.f32 1.442695, %v964_v56  ;;  %v1073_v4 = vmul.f32 1.442695, %v963_v63  ;;  %v1061_v29 = vmul.f32 1.442695, %v957_v11  ;;  %v871_v56 = vpop.xlane.xlu0 %870 }
 0x35e   : > { %v886_v51 = vpop.xlane.xlu1 %885  ;;  %1642 = vpow2.f32 %v1081_v31  ;;  %v2474_v63 = vld [vmem:[#allocation16_spill] sm:$0xff]  ;;  %v949_v0 = vsub.f32 %v2475_v44, %v871_v56  ;;  %v1450_v11 = vcombine.high %v1145_v45, %v1145_v45  ;;  %v1688_v44 = vld [vmem:[%s1994_s10 + $0x28] sm:$0xff] }
 0x35f   : > { %1644 = vpow2.f32 %v1075_v54  ;;  %v960_v55 = vsub.f32 %v2162_v37, %v886_v51  ;;  %v2466_v37 = vld [vmem:[#allocation24_spill] sm:$0xff] }
 0x360   : > { %v1625_v15 = vpop.eup %1624  ;;  %1646 = vpow2.f32 %v1077_v21  ;;  %v959_v26 = vsub.f32 %v2466_v37, %v886_v51 }
 0x361   : > { %v1627_v46 = vpop.eup %1626  ;;  %1648 = vpow2.f32 %v1071_v43  ;;  %v1067_v18 = vmul.f32 1.442695, %v960_v55 }
 0x362   : > { %v1629_v35 = vpop.eup %1628  ;;  %v1138_v16 = vpack.c.bf16 %v1627_v46, %v1623_v61  ;;  %v880_v30 = vpop.xlane.xlu1 %879  ;;  %1650 = vpow2.f32 %v1073_v4  ;;  %v1065_v52 = vmul.f32 1.442695, %v959_v26  ;;  %v2470_v61 = vld [vmem:[#allocation20_spill] sm:$0xff]  ;;  %v2472_v46 = vld [vmem:[#allocation18_spill] sm:$0xff] }
 0x363   : > { %v1137_v38 = vpack.c.bf16 %v1625_v15, %v1629_v35  ;;  %v1631_v40 = vpop.eup %1630  ;;  %1652 = vpow2.f32 %v1067_v18  ;;  %v956_v7 = vsub.f32 %v2467_v59, %v880_v30  ;;  %v955_v33 = vsub.f32 %v2470_v61, %v880_v30  ;;  %v2471_v15 = vld [vmem:[#allocation17_spill] sm:$0xff]  ;;  %v2473_v35 = vld [vmem:[#allocation15_spill] sm:$0xff] }
 0x364   : > { %1191 = vmatprep.subr.bf16.mxu1 %v1138_v16  ;;  %v1633_v62 = vpop.eup %1632  ;;  %1654 = vpow2.f32 %v1069_v36  ;;  %v953_v31 = vsub.f32 %v2472_v46, %v877_v23  ;;  %v950_v54 = vsub.f32 %v2473_v35, %v871_v56  ;;  %v1045_v18 = vmul.f32 1.442695, %v949_v0  ;;  %v1682_v46 = vld [vmem:[%s1994_s10] sm:$0xff]  ;;  %v1683_v35 = vld [vmem:[%s1994_s10 + $0x10] sm:$0xff] }
 0x365   : > { %v1136_v3 = vpack.c.bf16 %v1633_v62, %v1631_v40  ;;  %1192 = vmatpush2.bf16.xpose.msra.mxu1 %v1137_v38  ;;  %v1635_v53 = vpop.eup %1634  ;;  %1656 = vpow2.f32 %v1063_v42  ;;  %v1059_v5 = vmul.f32 1.442695, %v956_v7  ;;  %v1057_v16 = vmul.f32 1.442695, %v955_v33 }
 0x366   : > { %v874_v48 = vpop.xlane.xlu1 %873  ;;  %1658 = vpow2.f32 %v1065_v52  ;;  %v1053_v40 = vmul.f32 1.442695, %v953_v31  ;;  %v1047_v62 = vmul.f32 1.442695, %v950_v54 }
 0x367   : > { %1193 = vmatprep.subr.bf16.mxu1 %v1136_v3  ;;  %1660 = vpow2.f32 %v1059_v5  ;;  %v952_v9 = vsub.f32 %v2471_v15, %v874_v48  ;;  %v951_v55 = vsub.f32 %v2474_v63, %v874_v48  ;;  %v1686_v63 = vld [vmem:[%s1994_s10 + $0x8] sm:$0xff] }
 0x368   : > { %v1637_v41 = vpop.eup %1636  ;;  %1662 = vpow2.f32 %v1061_v29 }
 0x369   : > { %v1639_v24 = vpop.eup %1638  ;;  %1664 = vpow2.f32 %v1055_v25  ;;  %v1051_v51 = vmul.f32 1.442695, %v952_v9  ;;  %v1049_v2 = vmul.f32 1.442695, %v951_v55 }
 0x36a   : > { %v1641_v20 = vpop.eup %1640  ;;  %v1135_v49 = vpack.c.bf16 %v1635_v53, %v1639_v24  ;;  %1666 = vpow2.f32 %v1057_v16  ;;  %v1684_v16 = vld [vmem:[%s1994_s10 + $0x20] sm:$0xff] }
 0x36b   : > { %v1134_v8 = vpack.c.bf16 %v1637_v41, %v1641_v20  ;;  %v1643_v1 = vpop.eup %1642  ;;  %1668 = vpow2.f32 %v1051_v51  ;;  %v1685_v51 = vld [vmem:[%s1994_s10 + $0x30] sm:$0xff] }
 0x36c   : > { %v1645_v6 = vpop.eup %1644  ;;  %1670 = vpow2.f32 %v1053_v40 }
 0x36d   : > { %1194 = vmatpush2.bf16.xpose.msra.mxu1 %v1135_v49  ;;  %v1647_v60 = vpop.eup %1646  ;;  %1672 = vpow2.f32 %v1047_v62 }
 0x36e   : > { %1195 = vmatprep.subr.bf16.mxu1 %v1134_v8  ;;  %v1649_v17 = vpop.eup %1648  ;;  %v1133_v58 = vpack.c.bf16 %v1643_v1, %v1647_v60  ;;  %1674 = vpow2.f32 %v1049_v2  ;;  %v1689_v2 = vld [vmem:[%s1994_s10 + $0x38] sm:$0xff] }
 0x36f   : > { %v1132_v14 = vpack.c.bf16 %v1645_v6, %v1649_v17  ;;  %v1651_v21 = vpop.eup %1650  ;;  %1676 = vpow2.f32 %v1045_v18 }
 0x370   : > { %v1653_v38 = vpop.eup %1652 }
 0x371   : > { %v1655_v43 = vpop.eup %1654 }
 0x372   : > { %v1657_v47 = vpop.eup %1656  ;;  %v1131_v3 = vpack.c.bf16 %v1651_v21, %v1655_v43 }
 0x373   : > { %v1130_v57 = vpack.c.bf16 %v1653_v38, %v1657_v47  ;;  %v1659_v4 = vpop.eup %1658 }
 0x374   : > { %v1661_v53 = vpop.eup %1660 }
 0x375   : > { %1196 = vmatpush2.bf16.xpose.msra.mxu1 %v1133_v58  ;;  %v1663_v41 = vpop.eup %1662 }
 0x376   : > { %1197 = vmatprep.subr.bf16.mxu1 %v1132_v14  ;;  %v1665_v36 = vpop.eup %1664  ;;  %v1129_v30 = vpack.c.bf16 %v1659_v4, %v1663_v41 }
 0x377   : > { %v1128_v24 = vpack.c.bf16 %v1661_v53, %v1665_v36  ;;  %v1667_v42 = vpop.eup %1666 }
 0x378   : > { %v1669_v20 = vpop.eup %1668 }
 0x379   : > { %v1671_v23 = vpop.eup %1670 }
 0x37a   : > { %v1673_v37 = vpop.eup %1672  ;;  %v1127_v26 = vpack.c.bf16 %v1667_v42, %v1671_v23 }
 0x37b   : > { %v1126_v49 = vpack.c.bf16 %v1669_v20, %v1673_v37  ;;  %v1675_v59 = vpop.eup %1674 }
 0x37c   : > { %v1677_v7 = vpop.eup %1676 }
 0x37d   : > { %1198 = vmatpush2.bf16.xpose.msra.mxu1 %v1131_v3  ;;  %v1125_v8 = vpack.c.bf16 %v1675_v59, %v1677_v7  ;;  %v1687_v3 = vld [vmem:[%s1994_s10 + $0x18] sm:$0xff] }
 0x37e   : > { %1199 = vmatprep.subr.bf16.mxu1 %v1130_v57 }
 0x385   : > { %1200 = vmatpush2.bf16.xpose.msra.mxu1 %v1129_v30 }
 0x386   : > { %1201 = vmatprep.subr.bf16.mxu1 %v1128_v24 }
 0x38d   : > { %1202 = vmatpush2.bf16.xpose.msra.mxu1 %v1127_v26 }
 0x38e   : > { %1203 = vmatprep.subr.bf16.mxu1 %v1126_v49 }
 0x395   : > { %1204 = vmatpush2.bf16.xpose.msra.mxu1 %v1125_v8 }
 0x39c   : > { %1206 = vmatmul.mubr.bf16.vlgmr.msra.gmra.mxu1 %v1690_v13 }
 0x39d   : > { %1215 = vmatprep.mubr.bf16.mxu1 %v1692_v10  ;;  %v1240_v10 = vshrl.u32 %v1239_v39, 7 }
 0x39f   : > { %v1241_v48 = vsub.s32 0, %v1240_v10 }
 0x3a4   : > { %1216 = vmatmul.mubr.bf16.gmra.mxu1 %v1693_v28  ;;  %v1236_v28 = vstv %s279_s15 }
 0x3a5   : > { %1225 = vmatprep.mubr.bf16.mxu1 %v1450_v11 }
 0x3ac   : > { %1226 = vmatmul.mubr.bf16.gmra.mxu1 %v1449_v32 }
 0x45c   : > { %v1207_v50 = vpop.f32.mrf.mxu1 }
 0x45e   : > { %v1209_v52 = vpop.f32.mrf.mxu1 }
 0x460   : > { %v1211_v1 = vpop.f32.mrf.mxu1 }
 0x462   : > { %v1213_v5 = vpop.f32.mrf.mxu1 }
 0x464   : > { %v1217_v6 = vpop.f32.mrf.mxu1 }
 0x466   : > { %v1219_v22 = vpop.f32.mrf.mxu1 }
 0x468   : > { %v1221_v27 = vpop.f32.mrf.mxu1 }
 0x46a   : > { %v1223_v13 = vpop.f32.mrf.mxu1 }
 0x46c   : > { %v1227_v29 = vpop.f32.mrf.mxu1 }
 0x46d   : > { %1678 = vrcp.f32 %v1227_v29 }
 0x46e   : > { %v1229_v19 = vpop.f32.mrf.mxu1 }
 0x46f   : > { %1680 = vrcp.f32 %v1229_v19 }
 0x470   : > { %v1231_v12 = vpop.f32.mrf.mxu1 }
 0x472   : > { %v1232_v34 = vpop.f32.mrf.mxu1 }
 0x47a   : > { %v1679_v60 = vpop.eup %1678 }
 0x47b   : > { %v1237_v25 = vmul.f32 %v1679_v60, %v1236_v28 }
 0x47c   : > { %v1681_v17 = vpop.eup %1680 }
 0x47d   : > { %v1242_v56 = vrot.slane %v1237_v25, %v1241_v48  ;;  %v1238_v61 = vmul.f32 %v1681_v17, %v1236_v28 }
 0x47f   : > { %v1247_v33 = vmul.f32 %v1242_v56, %v1207_v50  ;;  %v1249_v58 = vmul.f32 %v1242_v56, %v1211_v1  ;;  %v1251_v15 = vmul.f32 %v1242_v56, %v1217_v6  ;;  %v1253_v9 = vmul.f32 %v1242_v56, %v1221_v27 }
 0x480   : > { %v1246_v14 = vrot.slane %v1238_v61, %v1241_v48 }
 0x481   : > { %v1255_v31 = vadd.f32 %v1682_v46, %v1247_v33  ;;  %v1257_v54 = vadd.f32 %v1683_v35, %v1249_v58  ;;  %v1259_v21 = vadd.f32 %v1684_v16, %v1251_v15  ;;  %v1261_v38 = vadd.f32 %v1685_v51, %v1253_v9 }
 0x482   : > { %v1248_v40 = vmul.f32 %v1246_v14, %v1209_v52  ;;  %v1250_v43 = vmul.f32 %v1246_v14, %v1213_v5  ;;  %v1252_v62 = vmul.f32 %v1246_v14, %v1219_v22  ;;  %v1254_v47 = vmul.f32 %v1246_v14, %v1223_v13 }
 0x483   : > { %1263 = vst [vmem:[%s2346_s27] sm:$0xff] %v1255_v31  ;;  %1265 = vst [vmem:[%s2346_s27 + $0x10] sm:$0xff] %v1257_v54 }
 0x484   : > { %1267 = vst [vmem:[%s2346_s27 + $0x20] sm:$0xff] %v1259_v21  ;;  %1269 = vst [vmem:[%s2346_s27 + $0x30] sm:$0xff] %v1261_v38  ;;  %v1256_v55 = vadd.f32 %v1686_v63, %v1248_v40  ;;  %v1258_v57 = vadd.f32 %v1687_v3, %v1250_v43  ;;  %v1260_v0 = vadd.f32 %v1688_v44, %v1252_v62 }
 0x485   : > { %v1262_v4 = vadd.f32 %v1689_v2, %v1254_v47 }
 0x486   : > { %1264 = vst [vmem:[%s2346_s27 + $0x8] sm:$0xff] %v1256_v55  ;;  %1266 = vst [vmem:[%s2346_s27 + $0x18] sm:$0xff] %v1258_v57 }
 0x487   : > { %1268 = vst [vmem:[%s2346_s27 + $0x28] sm:$0xff] %v1260_v0  ;;  %1270 = vst [vmem:[%s2346_s27 + $0x38] sm:$0xff] %v1262_v4 }
 0x488   : > { %1763 = shalt.err (!%p1760_p7)
}
 0x489   : > { %s1764_s10 = scalar_lea.hbm %s2360_s1, 1024  ;;  %s1768_s25 = scalar_lea.hbm %s2422_s4, 2048 }
 0x48a   : > { %p1765_p1 = scmp.ne.s32.totalorder %s2360_s1, %s1764_s10  ;;  %p1769_p3 = scmp.lt.s32.totalorder %s2360_s1, %s2422_s4 }
 0x48b   : > { %p1770_p8 = scmp.lt.s32.totalorder %s1768_s25, %s1764_s10 }
 0x48c   : > { %p1766_p10 = pnand %p1765_p1, %p1925_p9 }
 0x48d   : > { %p1771_p0 = por %p1770_p8, %p1769_p3 }
 0x48e   : > { %p1767_p13 = pneg %p1766_p10 }
 0x490   : > { %p1772_p2 = pnand %p1771_p0, %p1767_p13 }
 0x492   : > { %1775 = shalt.err (!%p1772_p2)
}
 0x493   : > { %s1844_s15 = smov 256   ;;  %s1845_s26 = smov 16  }
 0x494   : > { %1470 = dma.vmem_to_hbm [thread:$0]  (%p1925_p9), %s2362_s7, 1024, %s2360_s1, %s1272_s14, %s1844_s15, %s1844_s15, %s1845_s26  }
 0x495 PF: > { %s1302_s27 = sand.u32 1, %s1814_s17   ;;  %p1480_p5 = pnand %p1400_p12, %p1932_p11 }
 0x496   : > { %s1303_s20 = scalar_lea.sflag [#allocation7], %s1302_s27 }
 0x497   : > { %p1481_p6 = pneg %p1480_p5 }
 0x499   : > { %1809 = dma.done.wait (%p1481_p6), %s1303_s20, 1024  }
 0x49a   : > { %1811 = vsyncadd (%p1481_p6), %s1303_s20, 4294966272  ;;  %s24_s22 = sadd.s32 1, %s1834_s22   ;;  %s2476_s17 = smov %s1818_s18 }
 0x49b   : > { %p21_p4 = scmp.ge.s32.totalorder %s24_s22, 4   ;;  %s2477_s18 = smov %s1822_s19 }
 0x49c   : > { %s2478_s19 = smov %s1930_s30  ;;  %s2479_s20 = smov %s1830_s21 }
 0x49d   : > { %s2480_s21 = smov %s2482_s24  ;;  %23 = sbr.rel (!%p21_p4) target bundleno = 11 (0xb), region = 98 }
 0x4a2   :  { %1308 = vsyncpa [#allocation6], 1 }
 0x4a3   :  { %1310 = vsyncpa [#allocation6 + $0x1], 1 }
 0x4a4   :  { %1311 = vsyncpa [#allocation9], 1 }
 0x4a5   :  { %1313 = vsyncpa [#allocation9 + $0x1], 1 }
 0x4a6   :  { %1314 = vsyncpa [#allocation7], 1 }
 0x4a7   :  { %1316 = vsyncpa [#allocation7 + $0x1], 1 }

</bundles_post_ra>
